<compile_context>
chip_gen: v7x
topology: tpu7x:2x2x1
jax: 0.10.0
libtpu: 0.0.40
codegen_flags: <defaults>
</compile_context>

<pallas_src>
import jax
import jax.numpy as jnp
from jax.experimental import pallas as pl
from jax.experimental.pallas import tpu as pltpu

INPUT_SIZE = 1
HIDDEN1 = 64
HIDDEN2 = 32
NUM_CLASSES = 10     # len(unique('Category' + str(i % 10))) == 10
LANE = 128           # lane-dense padded output width


def _round_up(n, m):
    return (n + m - 1) // m * m


def mlp_kernel(x_ref, w1_ref, b1_ref, w2_ref, b2_ref, w3_ref, b3_ref, o_ref):
    # fc1: in_features == 1 -> outer product on the VPU.
    #   [bt, 1] * [1, H1] (broadcast) + [1, H1] -> [bt, H1]
    h1 = jnp.maximum(x_ref[...] * w1_ref[...] + b1_ref[...], 0.0)
    # fc2: [bt, 64] @ [64, 32] on the MXU, f32 accumulation.
    h2 = jnp.maximum(
        jnp.dot(h1, w2_ref[...], preferred_element_type=jnp.float32) + b2_ref[...],
        0.0,
    )
    # fc3: [bt, 32] @ [32, 128] (cols 10..127 are zero padding) -> lane-dense store.
    out = jnp.dot(h2, w3_ref[...], preferred_element_type=jnp.float32) + b3_ref[...]
    o_ref[...] = out.astype(o_ref.dtype)


def simple_nn_forward(x, params, *, batch_tile=1024):
    """x: [B, INPUT_SIZE] float32. Returns logits [B, NUM_CLASSES] float32."""
    w1, b1, w2, b2, w3, b3 = params
    B, F = x.shape
    assert F == INPUT_SIZE

    # Batch tile: whole (8-row-padded) batch in one grid step when B is small,
    # otherwise large tiles to amortize per-step overhead and fill the MXU M edge.
    bt = min(batch_tile, _round_up(B, 8))
    bt = _round_up(bt, 8)
    Bp = _round_up(B, bt)
    if Bp != B:
        x = jnp.pad(x, ((0, Bp - B), (0, 0)))

    # Pad fc3 to a lane-dense (128-wide) output once; extra columns are zeros.
    w3p = jnp.pad(w3, ((0, 0), (0, LANE - NUM_CLASSES)))
    b3p = jnp.pad(b3, ((0, 0), (0, LANE - NUM_CLASSES)))

    grid = (Bp // bt,)

    in_specs = [
        pl.BlockSpec((bt, F), lambda i: (i, 0)),        # x (pipelined over batch)
        pl.BlockSpec(w1.shape, lambda i: (0, 0)),       # w1  (VMEM-resident)
        pl.BlockSpec(b1.shape, lambda i: (0, 0)),       # b1  (VMEM-resident)
        pl.BlockSpec(w2.shape, lambda i: (0, 0)),       # w2  (VMEM-resident)
        pl.BlockSpec(b2.shape, lambda i: (0, 0)),       # b2  (VMEM-resident)
        pl.BlockSpec(w3p.shape, lambda i: (0, 0)),      # w3 padded (VMEM-resident)
        pl.BlockSpec(b3p.shape, lambda i: (0, 0)),      # b3 padded (VMEM-resident)
    ]
    out_specs = pl.BlockSpec((bt, LANE), lambda i: (i, 0))

    out_padded = pl.pallas_call(
        mlp_kernel,
        out_shape=jax.ShapeDtypeStruct((Bp, LANE), jnp.float32),
        grid=grid,
        in_specs=in_specs,
        out_specs=out_specs,
        compiler_params=pltpu.CompilerParams(
            dimension_semantics=("parallel",)),
    )(x, w1, b1, w2, b2, w3p, b3p)

    return out_padded[:B, :NUM_CLASSES]


def init_params(key):
    """Deterministic init mimicking nn.Linear's U(-1/sqrt(fan_in), 1/sqrt(fan_in)).

    Weights are stored as [in_features, out_features] so the kernel computes
    y = x @ W + b (equivalent to PyTorch's x @ W.T + b with W transposed).
    """
    ks = jax.random.split(key, 6)

    def linear(kw, kb, fan_in, fan_out):
        bound = 1.0 / jnp.sqrt(jnp.float32(fan_in))
        w = jax.random.uniform(kw, (fan_in, fan_out), jnp.float32, -bound, bound)
        b = jax.random.uniform(kb, (1, fan_out), jnp.float32, -bound, bound)
        return w, b

    w1, b1 = linear(ks[0], ks[1], INPUT_SIZE, HIDDEN1)
    w2, b2 = linear(ks[2], ks[3], HIDDEN1, HIDDEN2)
    w3, b3 = linear(ks[4], ks[5], HIDDEN2, NUM_CLASSES)
    return (w1, b1, w2, b2, w3, b3)


def reference_forward(x, params):
    w1, b1, w2, b2, w3, b3 = params
    h1 = jnp.maximum(x @ w1 + b1, 0.0)
    h2 = jnp.maximum(h1 @ w2 + b2, 0.0)
    return h2 @ w3 + b3


if __name__ == "__main__":
    key = jax.random.PRNGKey(0)
    k_params, k_x = jax.random.split(key)

    params = init_params(k_params)

    # Small deterministic check (whole batch in one grid step).
    batch = 8
    x = jax.random.normal(k_x, (batch, INPUT_SIZE), jnp.float32)
    out = jax.block_until_ready(simple_nn_forward(x, params))
    ref = reference_forward(x, params)
    assert out.shape == (batch, NUM_CLASSES)
    assert jnp.allclose(out, ref, atol=1e-5, rtol=1e-5)

    # Larger / ragged batch to exercise tiling + padding path.
    batch2 = 1000  # not a multiple of the tile -> wrapper pads and slices back
    x2 = jax.random.normal(jax.random.PRNGKey(1), (batch2, INPUT_SIZE), jnp.float32)
    out2 = jax.block_until_ready(simple_nn_forward(x2, params, batch_tile=1024))
    ref2 = reference_forward(x2, params)
    assert out2.shape == (batch2, NUM_CLASSES)
    assert jnp.allclose(out2, ref2, atol=1e-5, rtol=1e-5)

    print("KERNEL_OK")
</pallas_src>

<mosaic_0001>
module attributes {stable_mosaic.version = 11 : i64} {
  func.func @mlp_kernel(%arg0: i32, %arg1: memref<8x1xf32, #tpu.memory_space<vmem>>, %arg2: memref<1x64xf32, #tpu.memory_space<vmem>>, %arg3: memref<1x64xf32, #tpu.memory_space<vmem>>, %arg4: memref<64x32xf32, #tpu.memory_space<vmem>>, %arg5: memref<1x32xf32, #tpu.memory_space<vmem>>, %arg6: memref<32x128xf32, #tpu.memory_space<vmem>>, %arg7: memref<1x128xf32, #tpu.memory_space<vmem>>, %arg8: memref<8x128xf32, #tpu.memory_space<vmem>>) attributes {dimension_semantics = [#tpu.dimension_semantics<parallel>], iteration_bounds = array<i64: 1>, scalar_prefetch = 0 : i64, scratch_operands = 0 : i64, tpu.core_type = #tpu.core_type<tc>, window_params = [{transform_indices = @transform_0, window_bounds = array<i64: 8, 1>}, {pipeline_mode = #tpu.pipeline_mode<synchronous>, transform_indices = @transform_1, window_bounds = array<i64: 1, 64>}, {pipeline_mode = #tpu.pipeline_mode<synchronous>, transform_indices = @transform_2, window_bounds = array<i64: 1, 64>}, {pipeline_mode = #tpu.pipeline_mode<synchronous>, transform_indices = @transform_3, window_bounds = array<i64: 64, 32>}, {pipeline_mode = #tpu.pipeline_mode<synchronous>, transform_indices = @transform_4, window_bounds = array<i64: 1, 32>}, {pipeline_mode = #tpu.pipeline_mode<synchronous>, transform_indices = @transform_5, window_bounds = array<i64: 32, 128>}, {pipeline_mode = #tpu.pipeline_mode<synchronous>, transform_indices = @transform_6, window_bounds = array<i64: 1, 128>}, {transform_indices = @transform_7, window_bounds = array<i64: 8, 128>}]} {
    %c0 = arith.constant 0 : index
    %c0_0 = arith.constant 0 : index
    %0 = vector.load %arg1[%c0, %c0_0] : memref<8x1xf32, #tpu.memory_space<vmem>>, vector<8x1xf32>
    %c0_1 = arith.constant 0 : index
    %c0_2 = arith.constant 0 : index
    %1 = vector.load %arg2[%c0_1, %c0_2] : memref<1x64xf32, #tpu.memory_space<vmem>>, vector<1x64xf32>
    %2 = vector.broadcast %0 : vector<8x1xf32> to vector<8x64xf32>
    %3 = vector.broadcast %1 : vector<1x64xf32> to vector<8x64xf32>
    %4 = arith.mulf %2, %3 : vector<8x64xf32>
    %c0_3 = arith.constant 0 : index
    %c0_4 = arith.constant 0 : index
    %5 = vector.load %arg3[%c0_3, %c0_4] : memref<1x64xf32, #tpu.memory_space<vmem>>, vector<1x64xf32>
    %6 = vector.broadcast %5 : vector<1x64xf32> to vector<8x64xf32>
    %7 = arith.addf %4, %6 : vector<8x64xf32>
    %cst = arith.constant 0.000000e+00 : f32
    %8 = vector.broadcast %cst : f32 to vector<8x64xf32>
    %9 = arith.maximumf %7, %8 : vector<8x64xf32>
    %c0_5 = arith.constant 0 : index
    %c0_6 = arith.constant 0 : index
    %10 = vector.load %arg4[%c0_5, %c0_6] : memref<64x32xf32, #tpu.memory_space<vmem>>, vector<64x32xf32>
    %cst_7 = arith.constant dense<0.000000e+00> : vector<8x32xf32>
    %11 = tpu.matmul %9, %10, %cst_7 {dimension_numbers = #tpu.dot_dimension_numbers<[1], [0], [0], [1], [0, 0, 1, 1], [], []>} : vector<8x64xf32>, vector<64x32xf32>, vector<8x32xf32> -> vector<8x32xf32>
    %c0_8 = arith.constant 0 : index
    %c0_9 = arith.constant 0 : index
    %12 = vector.load %arg5[%c0_8, %c0_9] : memref<1x32xf32, #tpu.memory_space<vmem>>, vector<1x32xf32>
    %13 = vector.broadcast %12 : vector<1x32xf32> to vector<8x32xf32>
    %14 = arith.addf %11, %13 : vector<8x32xf32>
    %cst_10 = arith.constant 0.000000e+00 : f32
    %15 = vector.broadcast %cst_10 : f32 to vector<8x32xf32>
    %16 = arith.maximumf %14, %15 : vector<8x32xf32>
    %c0_11 = arith.constant 0 : index
    %c0_12 = arith.constant 0 : index
    %17 = vector.load %arg6[%c0_11, %c0_12] : memref<32x128xf32, #tpu.memory_space<vmem>>, vector<32x128xf32>
    %cst_13 = arith.constant dense<0.000000e+00> : vector<8x128xf32>
    %18 = tpu.matmul %16, %17, %cst_13 {dimension_numbers = #tpu.dot_dimension_numbers<[1], [0], [0], [1], [0, 0, 1, 1], [], []>} : vector<8x32xf32>, vector<32x128xf32>, vector<8x128xf32> -> vector<8x128xf32>
    %c0_14 = arith.constant 0 : index
    %c0_15 = arith.constant 0 : index
    %19 = vector.load %arg7[%c0_14, %c0_15] : memref<1x128xf32, #tpu.memory_space<vmem>>, vector<1x128xf32>
    %20 = vector.broadcast %19 : vector<1x128xf32> to vector<8x128xf32>
    %21 = arith.addf %18, %20 : vector<8x128xf32>
    %c0_16 = arith.constant 0 : index
    %c0_17 = arith.constant 0 : index
    %22 = vector.load %arg8[%c0_16, %c0_17] : memref<8x128xf32, #tpu.memory_space<vmem>>, vector<8x128xf32>
    tpu.vector_store %arg8[%c0_16, %c0_17], %21 {strides = array<i32>} : memref<8x128xf32, #tpu.memory_space<vmem>>, vector<8x128xf32>,
    return
  }
  func.func @transform_0(%arg0: i32) -> (i32, i32) {
    %c0_i32 = arith.constant 0 : i32
    %c0_i32_0 = arith.constant 0 : i32
    return %arg0, %c0_i32 : i32, i32
  }
  func.func @transform_1(%arg0: i32) -> (i32, i32) {
    %c0_i32 = arith.constant 0 : i32
    %c0_i32_0 = arith.constant 0 : i32
    %c0_i32_1 = arith.constant 0 : i32
    return %c0_i32, %c0_i32_0 : i32, i32
  }
  func.func @transform_2(%arg0: i32) -> (i32, i32) {
    %c0_i32 = arith.constant 0 : i32
    %c0_i32_0 = arith.constant 0 : i32
    %c0_i32_1 = arith.constant 0 : i32
    return %c0_i32, %c0_i32_0 : i32, i32
  }
  func.func @transform_3(%arg0: i32) -> (i32, i32) {
    %c0_i32 = arith.constant 0 : i32
    %c0_i32_0 = arith.constant 0 : i32
    %c0_i32_1 = arith.constant 0 : i32
    return %c0_i32, %c0_i32_0 : i32, i32
  }
  func.func @transform_4(%arg0: i32) -> (i32, i32) {
    %c0_i32 = arith.constant 0 : i32
    %c0_i32_0 = arith.constant 0 : i32
    %c0_i32_1 = arith.constant 0 : i32
    return %c0_i32, %c0_i32_0 : i32, i32
  }
  func.func @transform_5(%arg0: i32) -> (i32, i32) {
    %c0_i32 = arith.constant 0 : i32
    %c0_i32_0 = arith.constant 0 : i32
    %c0_i32_1 = arith.constant 0 : i32
    return %c0_i32, %c0_i32_0 : i32, i32
  }
  func.func @transform_6(%arg0: i32) -> (i32, i32) {
    %c0_i32 = arith.constant 0 : i32
    %c0_i32_0 = arith.constant 0 : i32
    %c0_i32_1 = arith.constant 0 : i32
    return %c0_i32, %c0_i32_0 : i32, i32
  }
  func.func @transform_7(%arg0: i32) -> (i32, i32) {
    %c0_i32 = arith.constant 0 : i32
    %c0_i32_0 = arith.constant 0 : i32
    return %arg0, %c0_i32 : i32, i32
  }
}

</mosaic_0001>

<bundles_post_ra>
// kernel: tpu_custom_call.1
= control target key start
LH: loop header
LB: loop body
LE: loop exit
PB: predicated region body
PF: predicated region fallthrough
CT: control target
= control target key end

     0   :  { %v338_v3 = vmov 0   ;;  %v339_v4 = vmov 0.0|0.0   ;;  %s446_s0 = inlined_call_operand.vmem [shape: f32[8,1], index: 0, kind: input, shape index: {}]   ;;  %s447_s1 = inlined_call_operand.vmem [shape: f32[1,64], index: 1, kind: input, shape index: {}]   ;;  %s448_s2 = inlined_call_operand.vmem [shape: f32[1,64], index: 2, kind: input, shape index: {}]   ;;  %s449_s3 = inlined_call_operand.vmem [shape: f32[64,32], index: 3, kind: input, shape index: {}]   ;;  %s450_s4 = inlined_call_operand.vmem [shape: f32[1,32], index: 4, kind: input, shape index: {}]   ;;  %s451_s5 = inlined_call_operand.vmem [shape: f32[32,128], index: 5, kind: input, shape index: {}]   ;;  %s452_s6 = inlined_call_operand.vmem [shape: f32[1,128], index: 6, kind: input, shape index: {}]   ;;  %s453_s7 = inlined_call_operand.hbm [shape: f32[8,128], index: 7, kind: output, shape index: {}]  }
   0x1   :  { %v27_v0 = vld [vmem:[%s446_s0] sm:$0xff]  ;;  %v51_v2 = vld [vmem:[%s449_s3 + $0x8] sm:$0xff]  ;;  %313 = vset.pattern.permute.xlu0 %v338_v3  ;;  %290 = vmatprep.subr.bf16.mxu0 %v339_v4  ;;  %v52_v6 = vld [vmem:[%s449_s3 + $0x10] sm:$0xff] }
   0x2   :  { %v50_v1 = vld [vmem:[%s449_s3] sm:$0xff]  ;;  %v53_v7 = vld [vmem:[%s449_s3 + $0x18] sm:$0xff]  ;;  %31 = vperm.xlu0 %313, %v27_v0   ;;  %302 = vmatprep.subr.bf16.mxu1 %v339_v4 }
   0x3   :  { %v291_v5 = vpack.c.bf16 %v51_v2, %v50_v1  ;;  %v294_v8 = vpack.c.bf16 %v53_v7, %v52_v6 }
   0x5   :  { %292 = vmatpush3.bf16.msra.mxu0 %v291_v5 }
   0x6   :  { %12 = vsyncpa [#allocation3], 0  ;;  %293 = vmatprep.subr.bf16.mxu0 %v339_v4  ;;  %v54_v9 = vld [vmem:[%s449_s3 + $0x20] sm:$0xff]  ;;  %v55_v10 = vld [vmem:[%s449_s3 + $0x28] sm:$0xff]  ;;  %vm340_vm0 = vmmov 0   ;;  %v341_v13 = vmov 0.0  }
   0x7   :  { %v297_v11 = vpack.c.bf16 %v55_v10, %v54_v9  ;;  %v56_v12 = vld [vmem:[%s449_s3 + $0x30] sm:$0xff]  ;;  %276 = vmatprep.mubr.msk.f32.mxu0 %vm340_vm0, %v341_v13  ;;  %v57_v14 = vld [vmem:[%s449_s3 + $0x38] sm:$0xff]  ;;  %v140_v15 = vld [vmem:[%s451_s5] sm:$0xff]  ;;  %287 = vmatprep.mubr.msk.f32.mxu1 %vm340_vm0, %v341_v13  ;;  %vm65_vm1 = vcmask 523264   ;;  %vm151_vm2 = vcmask 261120   ;;  %s342_s8 = smov [#allocation2]  }
   0x8   :  { %v141_v16 = vld [vmem:[%s451_s5 + $0x8] sm:$0xff]  ;;  %v300_v18 = vpack.c.bf16 %v57_v14, %v56_v12  ;;  %v240_v19 = vld [vmem:[%s447_s1] ss:$0 sm:$0xff]  ;;  %v142_v25 = vld [vmem:[%s451_s5 + $0x10] sm:$0xff]  ;;  %s232_s9 = sshll.u32 %s342_s8, 4  ;;  %s233_s9 = int_to_ptr.vmem [resolvable:$true] %s232_s9 }
   0x9   :  { %295 = vmatpush3.bf16.msra.mxu0 %v294_v8  ;;  %v303_v17 = vpack.c.bf16 %v141_v16, %v140_v15  ;;  %v241_v20 = vld [vmem:[%s448_s2] ss:$0 sm:$0xff]  ;;  %v143_v26 = vld [vmem:[%s451_s5 + $0x18] sm:$0xff]  ;;  %s314_s5 = scalar_lea.vmem %s233_s9, 128  ;;  %p319_p1 = scmp.lt.s32.totalorder %s233_s9, %s233_s9 }
   0xa   :  { %296 = vmatprep.subr.bf16.mxu0 %v339_v4  ;;  %v306_v27 = vpack.c.bf16 %v143_v26, %v142_v25  ;;  %v242_v28 = vld [vmem:[%s450_s4] ss:$0 sm:$0xff]  ;;  %p315_p0 = scmp.ne.s32.totalorder %s233_s9, %s314_s5  ;;  %p320_p2 = scmp.lt.s32.totalorder %s314_s5, %s314_s5 }
   0xb   :  { %304 = vmatpush3.bf16.msra.mxu1 %v303_v17  ;;  %v244_v33 = vld [vmem:[%s452_s6] ss:$0 sm:$0xff] }
   0xc   :  { %305 = vmatprep.subr.bf16.mxu1 %v339_v4  ;;  %p321_p3 = por %p320_p2, %p319_p1 }
   0xd   :  { %298 = vmatpush3.bf16.msra.mxu0 %v297_v11 }
   0xe   :  { %299 = vmatprep.subr.bf16.mxu0 %v339_v4  ;;  %p322_p4 = pnand %p321_p3, %p315_p0 }
   0xf   :  { %307 = vmatpush3.bf16.msra.mxu1 %v306_v27 }
  0x11   :  { %301 = vmatpush3.bf16.msra.mxu0 %v300_v18 }
  0x81   :  { %v32_v21 = vpop.permute.xlu0 %31 }
  0x82   :  { %v40_v22 = vmul.f32 %v240_v19, %v32_v21 }
  0x84   :  { %v48_v23 = vadd.f32 %v241_v20, %v40_v22 }
  0x86   :  { %v49_v24 = vmax.f32 %v48_v23, 0.0 }
  0x88   :  { %277 = vmatmul.mubr.msk.f32.vlgmr.msra.gmra.mrb[0].mxu0 %vm65_vm1, %v49_v24 }
 0x15b   :  { %v135_v29 = vpop.f32.mrb[0].mxu0 }
 0x15c   :  { %v136_v30 = vadd.f32 %v242_v28, %v135_v29  ;;  %v278_v31 = vpop.f32.mrb[1].mxu0 }
 0x15e   :  { %v139_v32 = vmax.f32 %v136_v30, 0.0 }
 0x160   :  { %288 = vmatmul.mubr.msk.f32.vlgmr.msra.gmra.mrb[0].mxu1 %vm151_vm2, %v139_v32 }
 0x233   :  { %v221_v34 = vpop.f32.mrb[0].mxu1 }
 0x234   :  { %v222_v35 = vadd.f32 %v244_v33, %v221_v34  ;;  %v289_v36 = vpop.f32.mrb[1].mxu1 }
 0x236   :  { %225 = vst [vmem:[#allocation2] sm:$0xff] %v222_v35 }
 0x237   :  { %325 = shalt.err (!%p322_p4)
}
 0x238   :  { %s326_s0 = scalar_lea.hbm %s453_s7, 128 }
 0x239   :  { %p327_p5 = scmp.ne.s32.totalorder %s453_s7, %s326_s0  ;;  %p330_p6 = scmp.lt.u32.totalorder %s326_s0, %s453_s7 }
 0x23b   :  { %p332_p7 = pnand %p330_p6, %p327_p5 }
 0x23d   :  { %335 = shalt.err (!%p332_p7)
}
 0x23e   :  { %235 = dma.vmem_to_hbm [thread:$0]  %s233_s9, 128, %s453_s7, [#allocation3]  }
 0x23f   :  { %336 = dma.done.wait [#allocation3], 128  }
 0x240   :  { %337 = vsyncadd [#allocation3], 4294967168 }
 0x241   :  { %239 = vsyncpa [#allocation3], 1 }

</bundles_post_ra>
